<compile_context>
chip_gen: v6e
topology: v6e:2x2x1
jax: 0.10.0
libtpu: 0.0.40
codegen_flags: <defaults>
</compile_context>

<pallas_src>
import functools

import jax
import jax.numpy as jnp
from jax.experimental import pallas as pl
from jax.experimental.pallas import tpu as pltpu


def _round_up(n, m):
    return ((n + m - 1) // m) * m


def _linear_dims(layers, n_blocks, input_dim):
    """(d_in, d_out) of every Linear, in execution order."""
    enc = [input_dim] + list(layers)
    dec = list(reversed(layers)) + [input_dim]
    dims = []
    for _ in range(n_blocks):
        dims += list(zip(enc[:-1], enc[1:]))            # encoder linears
        dims += list(zip(dec[:-1], dec[1:]))            # decoder linears
    dims += [(input_dim, input_dim), (input_dim, input_dim)]  # transition
    return dims


def _group_layout(dims):
    """Group linears by lane-padded (Pi, Po) shape.

    Returns (shapes, counts, slots): shapes[g] = padded shape of group g,
    counts[g] = #linears in group g, slots[j] = (g, s) meaning linear j is
    slot s of group g's stacked weight tensor.
    """
    shapes, counts, slots, gid_of = [], [], [], {}
    for d_in, d_out in dims:
        ps = (_round_up(d_in, 128), _round_up(d_out, 128))
        if ps not in gid_of:
            gid_of[ps] = len(shapes)
            shapes.append(ps)
            counts.append(0)
        g = gid_of[ps]
        slots.append((g, counts[g]))
        counts[g] += 1
    return shapes, counts, slots


# ----------------------------------------------------------------------------
# Parameter construction: per-shape stacked, lane-padded weights/biases.
# ----------------------------------------------------------------------------
def init_params(key, layers, n_blocks, input_dim, dtype=jnp.bfloat16):
    """Returns (w_stacks, b_stacks): one (count, Pi, Po) weight stack and one
    (count, 1, Po) bias stack per distinct padded linear shape.  Zero-padding
    unused rows/cols keeps the math bit-exact w.r.t. the unpadded module.
    Convention: y = x @ W + b (transpose torch nn.Linear weights when porting).
    """
    dims = _linear_dims(layers, n_blocks, input_dim)
    shapes, _, slots = _group_layout(dims)
    keys = jax.random.split(key, len(dims))
    per_w = [[] for _ in shapes]
    per_b = [[] for _ in shapes]
    for k, (d_in, d_out), (g, _) in zip(keys, dims, slots):
        Pi, Po = shapes[g]
        kw, kb = jax.random.split(k)
        bound = 1.0 / (d_in ** 0.5)                     # PyTorch-like init
        w = jax.random.uniform(kw, (d_in, d_out), jnp.float32, -bound, bound)
        b = jax.random.uniform(kb, (1, d_out), jnp.float32, -bound, bound)
        per_w[g].append(jnp.zeros((Pi, Po), jnp.float32).at[:d_in, :d_out].set(w))
        per_b[g].append(jnp.zeros((1, Po), jnp.float32).at[:, :d_out].set(b))
    w_stacks = tuple(jnp.stack(ws).astype(dtype) for ws in per_w)
    b_stacks = tuple(jnp.stack(bs).astype(dtype) for bs in per_b)
    return w_stacks, b_stacks


# ----------------------------------------------------------------------------
# Pallas kernel: one batch tile, all residual blocks + transition fused.
# ----------------------------------------------------------------------------
def _residual_ae_kernel(n_layers, n_blocks, n_groups, slots, *refs):
    x_ref = refs[0]
    w_refs = refs[1:1 + n_groups]
    b_refs = refs[1 + n_groups:1 + 2 * n_groups]
    out_ref = refs[1 + 2 * n_groups]
    lat_ref = refs[2 + 2 * n_groups]
    xin_ref = refs[3 + 2 * n_groups]        # VMEM scratch: residual carry x_in
    xout_ref = refs[4 + 2 * n_groups]       # VMEM scratch: decoder output x_out

    def linear(h, j):
        g, s = slots[j]
        w = w_refs[g][s]                    # (Pi, Po), static index -> no copy
        b = b_refs[g][s]                    # (1, Po)
        acc = jnp.dot(h.astype(w.dtype), w, preferred_element_type=jnp.float32)
        return acc + b.astype(jnp.float32)

    xin_ref[...] = x_ref[...].astype(jnp.float32)

    j = 0
    for blk in range(n_blocks):
        if blk > 0:                         # skip dead x + zeros add on block 0
            xin_ref[...] = xin_ref[...] + xout_ref[...]
        h = xin_ref[...]
        # encoder: Linear (+ LeakyReLU, dropout) for all but the last layer
        for li in range(n_layers):
            h = linear(h, j); j += 1
            if li < n_layers - 1:
                h = jnp.where(h > 0, h, 0.01 * h)       # LeakyReLU(0.01), f32
        lat_ref[blk, :, :] = h.astype(lat_ref.dtype)    # lane-dense store
        # decoder: Linear (+ ReLU, dropout) for all but the last layer
        for li in range(n_layers):
            h = linear(h, j); j += 1
            if li < n_layers - 1:
                h = jnp.maximum(h, 0.0)                 # ReLU, f32
        xout_ref[...] = h

    # transition: Linear -> ReLU -> Linear on (x_in + x_out)
    t = xin_ref[...] + xout_ref[...]
    t = jnp.maximum(linear(t, j), 0.0); j += 1
    t = linear(t, j)
    out_ref[...] = t.astype(out_ref.dtype)


def _pick_block_b(batch):
    # 256 fills the 256-wide MXU M dim on v6e/v7x and amortizes the ~0.35 us
    # per-grid-step overhead; fall back to 128 (then the batch itself) so the
    # grid keeps >= 2 tiles whenever possible (v7x has 2 TensorCores).
    for bb in (256, 128):
        if pl.cdiv(batch, bb) >= 2:
            return bb
    return min(_round_up(max(batch, 1), 8), 128)


# ----------------------------------------------------------------------------
# Wrapper: pad, tile over batch, unpad / re-layout latents.
# ----------------------------------------------------------------------------
def residual_ae_forward(x, w_stacks, b_stacks, layers, n_blocks, input_dim, *,
                        block_b=None, out_dtype=jnp.float32,
                        latent_dtype=jnp.float32, flat_latents=True):
    batch = x.shape[0]
    n_layers = len(layers)
    latent_dim = layers[-1]
    dims = _linear_dims(layers, n_blocks, input_dim)
    shapes, _, slots = _group_layout(dims)
    n_groups = len(shapes)
    assert len(w_stacks) == n_groups and len(b_stacks) == n_groups
    P_x = _round_up(input_dim, 128)
    P_lat = _round_up(latent_dim, 128)
    w_dtype = w_stacks[0].dtype

    if block_b is None:
        block_b = _pick_block_b(batch)
    b_pad = _round_up(batch, block_b)

    # Cast x to the weight dtype so the input DMA is bf16 on the bf16 path.
    x_p = jnp.zeros((b_pad, P_x), w_dtype).at[:batch, :input_dim].set(
        x.astype(w_dtype))

    kernel = functools.partial(_residual_ae_kernel, n_layers, n_blocks,
                               n_groups, tuple(slots))

    flops = 2 * b_pad * sum(shapes[g][0] * shapes[g][1] for g, _ in slots)
    bytes_accessed = int(
        x_p.size * x_p.dtype.itemsize
        + sum(w.size * w.dtype.itemsize for w in w_stacks)
        + sum(b.size * b.dtype.itemsize for b in b_stacks)
        + b_pad * P_x * jnp.dtype(out_dtype).itemsize
        + n_blocks * b_pad * P_lat * jnp.dtype(latent_dtype).itemsize)

    # Weights/biases: whole stack resident in VMEM, single-buffered (they are
    # constant across the batch grid, so no pipelining / double-buffering).
    resident = pl.BlockSpec(memory_space=pltpu.MemorySpace.VMEM)

    out_p, lat_p = pl.pallas_call(
        kernel,
        grid=(b_pad // block_b,),
        in_specs=[pl.BlockSpec((block_b, P_x), lambda i: (i, 0))]
                 + [resident] * (2 * n_groups),
        out_specs=(
            pl.BlockSpec((block_b, P_x), lambda i: (i, 0)),              # transition
            pl.BlockSpec((n_blocks, block_b, P_lat), lambda i: (0, i, 0)),  # latents
        ),
        out_shape=(
            jax.ShapeDtypeStruct((b_pad, P_x), out_dtype),
            jax.ShapeDtypeStruct((n_blocks, b_pad, P_lat), latent_dtype),
        ),
        scratch_shapes=[pltpu.VMEM((block_b, P_x), jnp.float32),   # x_in carry
                        pltpu.VMEM((block_b, P_x), jnp.float32)],  # x_out carry
        compiler_params=pltpu.CompilerParams(
            dimension_semantics=("parallel",)),
        cost_estimate=pl.CostEstimate(flops=flops, transcendentals=0,
                                      bytes_accessed=bytes_accessed),
    )(x_p, *w_stacks, *b_stacks)

    out = out_p[:batch, :input_dim]
    lat = lat_p[:, :batch, :latent_dim]             # (n_blocks, B, latent_dim)
    if flat_latents:                                # torch.cat(latents, dim=-1)
        lat = jnp.transpose(lat, (1, 0, 2)).reshape(batch, n_blocks * latent_dim)
    return out, lat


# ----------------------------------------------------------------------------
# Pure-JAX reference (same params; emulates the matmul-boundary dtype casts).
# ----------------------------------------------------------------------------
def residual_ae_reference(x, w_stacks, b_stacks, layers, n_blocks, input_dim):
    dims = _linear_dims(layers, n_blocks, input_dim)
    _, _, slots = _group_layout(dims)
    n_layers = len(layers)
    w_dtype = w_stacks[0].dtype

    def linear(h, j):
        g, s = slots[j]
        d_in, d_out = dims[j]
        W = w_stacks[g][s, :d_in, :d_out].astype(jnp.float32)
        B = b_stacks[g][s, :, :d_out].astype(jnp.float32)
        h = h.astype(w_dtype).astype(jnp.float32)   # matmul-boundary cast
        return jnp.dot(h, W, precision=jax.lax.Precision.HIGHEST) + B

    x_in = x.astype(w_dtype).astype(jnp.float32)    # input-DMA cast
    x_out = jnp.zeros_like(x_in)
    latents = []
    j = 0
    for _ in range(n_blocks):
        x_in = x_in + x_out
        h = x_in
        for li in range(n_layers):
            h = linear(h, j); j += 1
            if li < n_layers - 1:
                h = jnp.where(h > 0, h, 0.01 * h)
        latents.append(h)
        for li in range(n_layers):
            h = linear(h, j); j += 1
            if li < n_layers - 1:
                h = jnp.maximum(h, 0.0)
        x_out = h
    t = x_in + x_out
    t = jnp.maximum(linear(t, j), 0.0); j += 1
    t = linear(t, j)
    return t, jnp.concatenate(latents, axis=-1)


if __name__ == "__main__":
    key = jax.random.PRNGKey(0)
    kx1, kx2, kx3, kp1, kp3 = jax.random.split(key, 5)

    # ---- 1) f32 weights, tiny batch (padding + single-tile grid) -------------
    layers, n_blocks, input_dim = [64, 32], 2, 128
    batch = 8
    x = jax.random.normal(kx1, (batch, input_dim), jnp.float32)
    w32, b32 = init_params(kp1, layers, n_blocks, input_dim, dtype=jnp.float32)
    out, lat = residual_ae_forward(x, w32, b32, layers, n_blocks, input_dim)
    out, lat = jax.block_until_ready((out, lat))
    ref_out, ref_lat = residual_ae_reference(x, w32, b32, layers, n_blocks, input_dim)
    assert out.shape == (batch, input_dim)
    assert lat.shape == (batch, n_blocks * layers[-1])
    assert jnp.allclose(out, ref_out, atol=2e-3, rtol=2e-3)
    assert jnp.allclose(lat, ref_lat, atol=2e-3, rtol=2e-3)

    # ---- 2) bf16 weights (default), batch=512 -> two (256, P) parallel tiles,
    #         bf16 latent writeback -------------------------------------------
    wbf, bbf = init_params(kp1, layers, n_blocks, input_dim)       # bf16 default
    batch2 = 512
    x2 = jax.random.normal(kx2, (batch2, input_dim), jnp.float32)
    out2, lat2 = residual_ae_forward(x2, wbf, bbf, layers, n_blocks, input_dim,
                                     latent_dtype=jnp.bfloat16)
    out2, lat2 = jax.block_until_ready((out2, lat2))
    ref_out2, ref_lat2 = residual_ae_reference(x2, wbf, bbf, layers, n_blocks,
                                               input_dim)
    assert jnp.allclose(out2, ref_out2, atol=1e-2, rtol=1e-2)
    assert jnp.allclose(lat2.astype(jnp.float32), ref_lat2, atol=2e-2, rtol=2e-2)
    assert bool(jnp.all(jnp.isfinite(out2)))

    # ---- 3) per-layer padding / multi-group stacks (input_dim > hidden dims),
    #         unflattened latent layout ----------------------------------------
    layers3, n_blocks3, input_dim3 = [128, 64], 2, 256
    batch3 = 384
    x3 = jax.random.normal(kx3, (batch3, input_dim3), jnp.float32)
    w3, b3 = init_params(kp3, layers3, n_blocks3, input_dim3)      # bf16 default
    out3, lat3 = residual_ae_forward(x3, w3, b3, layers3, n_blocks3, input_dim3,
                                     flat_latents=False)
    out3, lat3 = jax.block_until_ready((out3, lat3))
    assert lat3.shape == (n_blocks3, batch3, layers3[-1])
    ref_out3, ref_lat3 = residual_ae_reference(x3, w3, b3, layers3, n_blocks3,
                                               input_dim3)
    assert jnp.allclose(out3, ref_out3, atol=1e-2, rtol=1e-2)
    lat3_flat = jnp.transpose(lat3, (1, 0, 2)).reshape(batch3, -1)
    assert jnp.allclose(lat3_flat, ref_lat3, atol=1e-2, rtol=1e-2)

    print("KERNEL_OK")
</pallas_src>

<mosaic_0001>
module attributes {stable_mosaic.version = 11 : i64} {
  func.func @_residual_ae_kernel(%arg0: i32, %arg1: memref<8x128xf32, #tpu.memory_space<vmem>>, %arg2: memref<10x128x128xf32, #tpu.memory_space<vmem>>, %arg3: memref<10x1x128xf32, #tpu.memory_space<vmem>>, %arg4: memref<8x128xf32, #tpu.memory_space<vmem>>, %arg5: memref<2x8x128xf32, #tpu.memory_space<vmem>>, %arg6: memref<8x128xf32, #tpu.memory_space<vmem>>, %arg7: memref<8x128xf32, #tpu.memory_space<vmem>>) attributes {dimension_semantics = [#tpu.dimension_semantics<parallel>], iteration_bounds = array<i64: 1>, scalar_prefetch = 0 : i64, scratch_operands = 2 : i64, tpu.core_type = #tpu.core_type<tc>, window_params = [{transform_indices = @transform_0, window_bounds = array<i64: 8, 128>}, {pipeline_mode = #tpu.pipeline_mode<synchronous>, transform_indices = @transform_1, window_bounds = array<i64: 10, 128, 128>}, {pipeline_mode = #tpu.pipeline_mode<synchronous>, transform_indices = @transform_2, window_bounds = array<i64: 10, 1, 128>}, {transform_indices = @transform_3, window_bounds = array<i64: 8, 128>}, {transform_indices = @transform_4, window_bounds = array<i64: 2, 8, 128>}]} {
    %c0 = arith.constant 0 : index
    %c0_0 = arith.constant 0 : index
    %0 = vector.load %arg1[%c0, %c0_0] : memref<8x128xf32, #tpu.memory_space<vmem>>, vector<8x128xf32>
    %c0_1 = arith.constant 0 : index
    %c0_2 = arith.constant 0 : index
    %1 = vector.load %arg6[%c0_1, %c0_2] : memref<8x128xf32, #tpu.memory_space<vmem>>, vector<8x128xf32>
    tpu.vector_store %arg6[%c0_1, %c0_2], %0 {strides = array<i32>} : memref<8x128xf32, #tpu.memory_space<vmem>>, vector<8x128xf32>,
    %c0_3 = arith.constant 0 : index
    %c0_4 = arith.constant 0 : index
    %2 = vector.load %arg6[%c0_3, %c0_4] : memref<8x128xf32, #tpu.memory_space<vmem>>, vector<8x128xf32>
    %c0_5 = arith.constant 0 : index
    %c0_6 = arith.constant 0 : index
    %c0_7 = arith.constant 0 : index
    %3 = vector.load %arg2[%c0_5, %c0_6, %c0_7] : memref<10x128x128xf32, #tpu.memory_space<vmem>>, vector<1x128x128xf32>
    %4 = vector.shape_cast %3 : vector<1x128x128xf32> to vector<128x128xf32>
    %c0_8 = arith.constant 0 : index
    %c0_9 = arith.constant 0 : index
    %c0_10 = arith.constant 0 : index
    %5 = vector.load %arg3[%c0_8, %c0_9, %c0_10] : memref<10x1x128xf32, #tpu.memory_space<vmem>>, vector<1x1x128xf32>
    %6 = vector.shape_cast %5 : vector<1x1x128xf32> to vector<1x128xf32>
    %cst = arith.constant dense<0.000000e+00> : vector<8x128xf32>
    %7 = tpu.matmul %2, %4, %cst {dimension_numbers = #tpu.dot_dimension_numbers<[1], [0], [0], [1], [0, 0, 1, 1], [], []>} : vector<8x128xf32>, vector<128x128xf32>, vector<8x128xf32> -> vector<8x128xf32>
    %8 = vector.broadcast %6 : vector<1x128xf32> to vector<8x128xf32>
    %9 = arith.addf %7, %8 : vector<8x128xf32>
    %cst_11 = arith.constant 0.000000e+00 : f32
    %10 = vector.broadcast %cst_11 : f32 to vector<8x128xf32>
    %11 = arith.cmpf ogt, %9, %10 : vector<8x128xf32>
    %cst_12 = arith.constant 0.00999999977 : f32
    %12 = vector.broadcast %cst_12 : f32 to vector<8x128xf32>
    %13 = arith.mulf %12, %9 : vector<8x128xf32>
    %14 = arith.select %11, %9, %13 : vector<8x128xi1>, vector<8x128xf32>
    %c1 = arith.constant 1 : index
    %c0_13 = arith.constant 0 : index
    %c0_14 = arith.constant 0 : index
    %15 = vector.load %arg2[%c1, %c0_13, %c0_14] : memref<10x128x128xf32, #tpu.memory_space<vmem>>, vector<1x128x128xf32>
    %16 = vector.shape_cast %15 : vector<1x128x128xf32> to vector<128x128xf32>
    %c1_15 = arith.constant 1 : index
    %c0_16 = arith.constant 0 : index
    %c0_17 = arith.constant 0 : index
    %17 = vector.load %arg3[%c1_15, %c0_16, %c0_17] : memref<10x1x128xf32, #tpu.memory_space<vmem>>, vector<1x1x128xf32>
    %18 = vector.shape_cast %17 : vector<1x1x128xf32> to vector<1x128xf32>
    %cst_18 = arith.constant dense<0.000000e+00> : vector<8x128xf32>
    %19 = tpu.matmul %14, %16, %cst_18 {dimension_numbers = #tpu.dot_dimension_numbers<[1], [0], [0], [1], [0, 0, 1, 1], [], []>} : vector<8x128xf32>, vector<128x128xf32>, vector<8x128xf32> -> vector<8x128xf32>
    %20 = vector.broadcast %18 : vector<1x128xf32> to vector<8x128xf32>
    %21 = arith.addf %19, %20 : vector<8x128xf32>
    %c0_19 = arith.constant 0 : index
    %c0_20 = arith.constant 0 : index
    %c0_21 = arith.constant 0 : index
    %22 = vector.load %arg5[%c0_19, %c0_20, %c0_21] : memref<2x8x128xf32, #tpu.memory_space<vmem>>, vector<1x8x128xf32>
    %23 = vector.shape_cast %22 : vector<1x8x128xf32> to vector<8x128xf32>
    %24 = vector.shape_cast %21 : vector<8x128xf32> to vector<1x8x128xf32>
    tpu.vector_store %arg5[%c0_19, %c0_20, %c0_21], %24 {strides = array<i32>} : memref<2x8x128xf32, #tpu.memory_space<vmem>>, vector<1x8x128xf32>,
    %c2 = arith.constant 2 : index
    %c0_22 = arith.constant 0 : index
    %c0_23 = arith.constant 0 : index
    %25 = vector.load %arg2[%c2, %c0_22, %c0_23] : memref<10x128x128xf32, #tpu.memory_space<vmem>>, vector<1x128x128xf32>
    %26 = vector.shape_cast %25 : vector<1x128x128xf32> to vector<128x128xf32>
    %c2_24 = arith.constant 2 : index
    %c0_25 = arith.constant 0 : index
    %c0_26 = arith.constant 0 : index
    %27 = vector.load %arg3[%c2_24, %c0_25, %c0_26] : memref<10x1x128xf32, #tpu.memory_space<vmem>>, vector<1x1x128xf32>
    %28 = vector.shape_cast %27 : vector<1x1x128xf32> to vector<1x128xf32>
    %cst_27 = arith.constant dense<0.000000e+00> : vector<8x128xf32>
    %29 = tpu.matmul %21, %26, %cst_27 {dimension_numbers = #tpu.dot_dimension_numbers<[1], [0], [0], [1], [0, 0, 1, 1], [], []>} : vector<8x128xf32>, vector<128x128xf32>, vector<8x128xf32> -> vector<8x128xf32>
    %30 = vector.broadcast %28 : vector<1x128xf32> to vector<8x128xf32>
    %31 = arith.addf %29, %30 : vector<8x128xf32>
    %cst_28 = arith.constant 0.000000e+00 : f32
    %32 = vector.broadcast %cst_28 : f32 to vector<8x128xf32>
    %33 = arith.maximumf %31, %32 : vector<8x128xf32>
    %c3 = arith.constant 3 : index
    %c0_29 = arith.constant 0 : index
    %c0_30 = arith.constant 0 : index
    %34 = vector.load %arg2[%c3, %c0_29, %c0_30] : memref<10x128x128xf32, #tpu.memory_space<vmem>>, vector<1x128x128xf32>
    %35 = vector.shape_cast %34 : vector<1x128x128xf32> to vector<128x128xf32>
    %c3_31 = arith.constant 3 : index
    %c0_32 = arith.constant 0 : index
    %c0_33 = arith.constant 0 : index
    %36 = vector.load %arg3[%c3_31, %c0_32, %c0_33] : memref<10x1x128xf32, #tpu.memory_space<vmem>>, vector<1x1x128xf32>
    %37 = vector.shape_cast %36 : vector<1x1x128xf32> to vector<1x128xf32>
    %cst_34 = arith.constant dense<0.000000e+00> : vector<8x128xf32>
    %38 = tpu.matmul %33, %35, %cst_34 {dimension_numbers = #tpu.dot_dimension_numbers<[1], [0], [0], [1], [0, 0, 1, 1], [], []>} : vector<8x128xf32>, vector<128x128xf32>, vector<8x128xf32> -> vector<8x128xf32>
    %39 = vector.broadcast %37 : vector<1x128xf32> to vector<8x128xf32>
    %40 = arith.addf %38, %39 : vector<8x128xf32>
    %c0_35 = arith.constant 0 : index
    %c0_36 = arith.constant 0 : index
    %41 = vector.load %arg7[%c0_35, %c0_36] : memref<8x128xf32, #tpu.memory_space<vmem>>, vector<8x128xf32>
    tpu.vector_store %arg7[%c0_35, %c0_36], %40 {strides = array<i32>} : memref<8x128xf32, #tpu.memory_space<vmem>>, vector<8x128xf32>,
    %c0_37 = arith.constant 0 : index
    %c0_38 = arith.constant 0 : index
    %42 = vector.load %arg6[%c0_37, %c0_38] : memref<8x128xf32, #tpu.memory_space<vmem>>, vector<8x128xf32>
    %c0_39 = arith.constant 0 : index
    %c0_40 = arith.constant 0 : index
    %43 = vector.load %arg7[%c0_39, %c0_40] : memref<8x128xf32, #tpu.memory_space<vmem>>, vector<8x128xf32>
    %44 = arith.addf %42, %43 : vector<8x128xf32>
    %c0_41 = arith.constant 0 : index
    %c0_42 = arith.constant 0 : index
    %45 = vector.load %arg6[%c0_41, %c0_42] : memref<8x128xf32, #tpu.memory_space<vmem>>, vector<8x128xf32>
    tpu.vector_store %arg6[%c0_41, %c0_42], %44 {strides = array<i32>} : memref<8x128xf32, #tpu.memory_space<vmem>>, vector<8x128xf32>,
    %c0_43 = arith.constant 0 : index
    %c0_44 = arith.constant 0 : index
    %46 = vector.load %arg6[%c0_43, %c0_44] : memref<8x128xf32, #tpu.memory_space<vmem>>, vector<8x128xf32>
    %c4 = arith.constant 4 : index
    %c0_45 = arith.constant 0 : index
    %c0_46 = arith.constant 0 : index
    %47 = vector.load %arg2[%c4, %c0_45, %c0_46] : memref<10x128x128xf32, #tpu.memory_space<vmem>>, vector<1x128x128xf32>
    %48 = vector.shape_cast %47 : vector<1x128x128xf32> to vector<128x128xf32>
    %c4_47 = arith.constant 4 : index
    %c0_48 = arith.constant 0 : index
    %c0_49 = arith.constant 0 : index
    %49 = vector.load %arg3[%c4_47, %c0_48, %c0_49] : memref<10x1x128xf32, #tpu.memory_space<vmem>>, vector<1x1x128xf32>
    %50 = vector.shape_cast %49 : vector<1x1x128xf32> to vector<1x128xf32>
    %cst_50 = arith.constant dense<0.000000e+00> : vector<8x128xf32>
    %51 = tpu.matmul %46, %48, %cst_50 {dimension_numbers = #tpu.dot_dimension_numbers<[1], [0], [0], [1], [0, 0, 1, 1], [], []>} : vector<8x128xf32>, vector<128x128xf32>, vector<8x128xf32> -> vector<8x128xf32>
    %52 = vector.broadcast %50 : vector<1x128xf32> to vector<8x128xf32>
    %53 = arith.addf %51, %52 : vector<8x128xf32>
    %cst_51 = arith.constant 0.000000e+00 : f32
    %54 = vector.broadcast %cst_51 : f32 to vector<8x128xf32>
    %55 = arith.cmpf ogt, %53, %54 : vector<8x128xf32>
    %cst_52 = arith.constant 0.00999999977 : f32
    %56 = vector.broadcast %cst_52 : f32 to vector<8x128xf32>
    %57 = arith.mulf %56, %53 : vector<8x128xf32>
    %58 = arith.select %55, %53, %57 : vector<8x128xi1>, vector<8x128xf32>
    %c5 = arith.constant 5 : index
    %c0_53 = arith.constant 0 : index
    %c0_54 = arith.constant 0 : index
    %59 = vector.load %arg2[%c5, %c0_53, %c0_54] : memref<10x128x128xf32, #tpu.memory_space<vmem>>, vector<1x128x128xf32>
    %60 = vector.shape_cast %59 : vector<1x128x128xf32> to vector<128x128xf32>
    %c5_55 = arith.constant 5 : index
    %c0_56 = arith.constant 0 : index
    %c0_57 = arith.constant 0 : index
    %61 = vector.load %arg3[%c5_55, %c0_56, %c0_57] : memref<10x1x128xf32, #tpu.memory_space<vmem>>, vector<1x1x128xf32>
    %62 = vector.shape_cast %61 : vector<1x1x128xf32> to vector<1x128xf32>
    %cst_58 = arith.constant dense<0.000000e+00> : vector<8x128xf32>
    %63 = tpu.matmul %58, %60, %cst_58 {dimension_numbers = #tpu.dot_dimension_numbers<[1], [0], [0], [1], [0, 0, 1, 1], [], []>} : vector<8x128xf32>, vector<128x128xf32>, vector<8x128xf32> -> vector<8x128xf32>
    %64 = vector.broadcast %62 : vector<1x128xf32> to vector<8x128xf32>
    %65 = arith.addf %63, %64 : vector<8x128xf32>
    %c1_59 = arith.constant 1 : index
    %c0_60 = arith.constant 0 : index
    %c0_61 = arith.constant 0 : index
    %66 = vector.load %arg5[%c1_59, %c0_60, %c0_61] : memref<2x8x128xf32, #tpu.memory_space<vmem>>, vector<1x8x128xf32>
    %67 = vector.shape_cast %66 : vector<1x8x128xf32> to vector<8x128xf32>
    %68 = vector.shape_cast %65 : vector<8x128xf32> to vector<1x8x128xf32>
    tpu.vector_store %arg5[%c1_59, %c0_60, %c0_61], %68 {strides = array<i32>} : memref<2x8x128xf32, #tpu.memory_space<vmem>>, vector<1x8x128xf32>,
    %c6 = arith.constant 6 : index
    %c0_62 = arith.constant 0 : index
    %c0_63 = arith.constant 0 : index
    %69 = vector.load %arg2[%c6, %c0_62, %c0_63] : memref<10x128x128xf32, #tpu.memory_space<vmem>>, vector<1x128x128xf32>
    %70 = vector.shape_cast %69 : vector<1x128x128xf32> to vector<128x128xf32>
    %c6_64 = arith.constant 6 : index
    %c0_65 = arith.constant 0 : index
    %c0_66 = arith.constant 0 : index
    %71 = vector.load %arg3[%c6_64, %c0_65, %c0_66] : memref<10x1x128xf32, #tpu.memory_space<vmem>>, vector<1x1x128xf32>
    %72 = vector.shape_cast %71 : vector<1x1x128xf32> to vector<1x128xf32>
    %cst_67 = arith.constant dense<0.000000e+00> : vector<8x128xf32>
    %73 = tpu.matmul %65, %70, %cst_67 {dimension_numbers = #tpu.dot_dimension_numbers<[1], [0], [0], [1], [0, 0, 1, 1], [], []>} : vector<8x128xf32>, vector<128x128xf32>, vector<8x128xf32> -> vector<8x128xf32>
    %74 = vector.broadcast %72 : vector<1x128xf32> to vector<8x128xf32>
    %75 = arith.addf %73, %74 : vector<8x128xf32>
    %cst_68 = arith.constant 0.000000e+00 : f32
    %76 = vector.broadcast %cst_68 : f32 to vector<8x128xf32>
    %77 = arith.maximumf %75, %76 : vector<8x128xf32>
    %c7 = arith.constant 7 : index
    %c0_69 = arith.constant 0 : index
    %c0_70 = arith.constant 0 : index
    %78 = vector.load %arg2[%c7, %c0_69, %c0_70] : memref<10x128x128xf32, #tpu.memory_space<vmem>>, vector<1x128x128xf32>
    %79 = vector.shape_cast %78 : vector<1x128x128xf32> to vector<128x128xf32>
    %c7_71 = arith.constant 7 : index
    %c0_72 = arith.constant 0 : index
    %c0_73 = arith.constant 0 : index
    %80 = vector.load %arg3[%c7_71, %c0_72, %c0_73] : memref<10x1x128xf32, #tpu.memory_space<vmem>>, vector<1x1x128xf32>
    %81 = vector.shape_cast %80 : vector<1x1x128xf32> to vector<1x128xf32>
    %cst_74 = arith.constant dense<0.000000e+00> : vector<8x128xf32>
    %82 = tpu.matmul %77, %79, %cst_74 {dimension_numbers = #tpu.dot_dimension_numbers<[1], [0], [0], [1], [0, 0, 1, 1], [], []>} : vector<8x128xf32>, vector<128x128xf32>, vector<8x128xf32> -> vector<8x128xf32>
    %83 = vector.broadcast %81 : vector<1x128xf32> to vector<8x128xf32>
    %84 = arith.addf %82, %83 : vector<8x128xf32>
    %c0_75 = arith.constant 0 : index
    %c0_76 = arith.constant 0 : index
    %85 = vector.load %arg7[%c0_75, %c0_76] : memref<8x128xf32, #tpu.memory_space<vmem>>, vector<8x128xf32>
    tpu.vector_store %arg7[%c0_75, %c0_76], %84 {strides = array<i32>} : memref<8x128xf32, #tpu.memory_space<vmem>>, vector<8x128xf32>,
    %c0_77 = arith.constant 0 : index
    %c0_78 = arith.constant 0 : index
    %86 = vector.load %arg6[%c0_77, %c0_78] : memref<8x128xf32, #tpu.memory_space<vmem>>, vector<8x128xf32>
    %c0_79 = arith.constant 0 : index
    %c0_80 = arith.constant 0 : index
    %87 = vector.load %arg7[%c0_79, %c0_80] : memref<8x128xf32, #tpu.memory_space<vmem>>, vector<8x128xf32>
    %88 = arith.addf %86, %87 : vector<8x128xf32>
    %c8 = arith.constant 8 : index
    %c0_81 = arith.constant 0 : index
    %c0_82 = arith.constant 0 : index
    %89 = vector.load %arg2[%c8, %c0_81, %c0_82] : memref<10x128x128xf32, #tpu.memory_space<vmem>>, vector<1x128x128xf32>
    %90 = vector.shape_cast %89 : vector<1x128x128xf32> to vector<128x128xf32>
    %c8_83 = arith.constant 8 : index
    %c0_84 = arith.constant 0 : index
    %c0_85 = arith.constant 0 : index
    %91 = vector.load %arg3[%c8_83, %c0_84, %c0_85] : memref<10x1x128xf32, #tpu.memory_space<vmem>>, vector<1x1x128xf32>
    %92 = vector.shape_cast %91 : vector<1x1x128xf32> to vector<1x128xf32>
    %cst_86 = arith.constant dense<0.000000e+00> : vector<8x128xf32>
    %93 = tpu.matmul %88, %90, %cst_86 {dimension_numbers = #tpu.dot_dimension_numbers<[1], [0], [0], [1], [0, 0, 1, 1], [], []>} : vector<8x128xf32>, vector<128x128xf32>, vector<8x128xf32> -> vector<8x128xf32>
    %94 = vector.broadcast %92 : vector<1x128xf32> to vector<8x128xf32>
    %95 = arith.addf %93, %94 : vector<8x128xf32>
    %cst_87 = arith.constant 0.000000e+00 : f32
    %96 = vector.broadcast %cst_87 : f32 to vector<8x128xf32>
    %97 = arith.maximumf %95, %96 : vector<8x128xf32>
    %c9 = arith.constant 9 : index
    %c0_88 = arith.constant 0 : index
    %c0_89 = arith.constant 0 : index
    %98 = vector.load %arg2[%c9, %c0_88, %c0_89] : memref<10x128x128xf32, #tpu.memory_space<vmem>>, vector<1x128x128xf32>
    %99 = vector.shape_cast %98 : vector<1x128x128xf32> to vector<128x128xf32>
    %c9_90 = arith.constant 9 : index
    %c0_91 = arith.constant 0 : index
    %c0_92 = arith.constant 0 : index
    %100 = vector.load %arg3[%c9_90, %c0_91, %c0_92] : memref<10x1x128xf32, #tpu.memory_space<vmem>>, vector<1x1x128xf32>
    %101 = vector.shape_cast %100 : vector<1x1x128xf32> to vector<1x128xf32>
    %cst_93 = arith.constant dense<0.000000e+00> : vector<8x128xf32>
    %102 = tpu.matmul %97, %99, %cst_93 {dimension_numbers = #tpu.dot_dimension_numbers<[1], [0], [0], [1], [0, 0, 1, 1], [], []>} : vector<8x128xf32>, vector<128x128xf32>, vector<8x128xf32> -> vector<8x128xf32>
    %103 = vector.broadcast %101 : vector<1x128xf32> to vector<8x128xf32>
    %104 = arith.addf %102, %103 : vector<8x128xf32>
    %c0_94 = arith.constant 0 : index
    %c0_95 = arith.constant 0 : index
    %105 = vector.load %arg4[%c0_94, %c0_95] : memref<8x128xf32, #tpu.memory_space<vmem>>, vector<8x128xf32>
    tpu.vector_store %arg4[%c0_94, %c0_95], %104 {strides = array<i32>} : memref<8x128xf32, #tpu.memory_space<vmem>>, vector<8x128xf32>,
    return
  }
  func.func @transform_0(%arg0: i32) -> (i32, i32) {
    %c0_i32 = arith.constant 0 : i32
    %c0_i32_0 = arith.constant 0 : i32
    return %arg0, %c0_i32 : i32, i32
  }
  func.func @transform_1(%arg0: i32) -> (i32, i32, i32) {
    %c0_i32 = arith.constant 0 : i32
    %c0_i32_0 = arith.constant 0 : i32
    %c0_i32_1 = arith.constant 0 : i32
    %c0_i32_2 = arith.constant 0 : i32
    return %c0_i32, %c0_i32_0, %c0_i32_1 : i32, i32, i32
  }
  func.func @transform_2(%arg0: i32) -> (i32, i32, i32) {
    %c0_i32 = arith.constant 0 : i32
    %c0_i32_0 = arith.constant 0 : i32
    %c0_i32_1 = arith.constant 0 : i32
    %c0_i32_2 = arith.constant 0 : i32
    return %c0_i32, %c0_i32_0, %c0_i32_1 : i32, i32, i32
  }
  func.func @transform_3(%arg0: i32) -> (i32, i32) {
    %c0_i32 = arith.constant 0 : i32
    %c0_i32_0 = arith.constant 0 : i32
    return %arg0, %c0_i32 : i32, i32
  }
  func.func @transform_4(%arg0: i32) -> (i32, i32, i32) {
    %c0_i32 = arith.constant 0 : i32
    %c0_i32_0 = arith.constant 0 : i32
    %c0_i32_1 = arith.constant 0 : i32
    return %c0_i32, %arg0, %c0_i32_0 : i32, i32, i32
  }
}

</mosaic_0001>

<bundles_post_ra>
// kernel: tpu_custom_call.1
= control target key start
LH: loop header
LB: loop body
LE: loop exit
PB: predicated region body
PF: predicated region fallthrough
CT: control target
= control target key end

     0   :  { %10 = vsyncpa [#allocation5], 0  ;;  %s1957_s0 = inlined_call_operand.hbm [shape: f32[8,128], index: 0, kind: input, shape index: {}]   ;;  %s1958_s1 = inlined_call_operand.hbm [shape: f32[10,128,128], index: 1, kind: input, shape index: {}]   ;;  %s1959_s2 = inlined_call_operand.hbm [shape: f32[10,1,128], index: 2, kind: input, shape index: {}]   ;;  %s1960_s3 = inlined_call_operand.hbm [shape: f32[8,128], index: 3, kind: output, shape index: {0}]   ;;  %s1961_s4 = inlined_call_operand.hbm [shape: f32[2,8,128], index: 4, kind: output, shape index: {1}]  }
   0x1   :  { %11 = vsyncpa [#allocation8], 0 }
   0x2   :  { %12 = vsyncpa [#allocation6], 0 }
   0x3   :  { %13 = vsyncpa [#allocation12], 0  ;;  %s1712_s15 = smov [#allocation7]  }
   0x4   :  { %s29_s16 = sshll.u32 %s1712_s15, 4  ;;  %s30_s16 = int_to_ptr.vmem [resolvable:$true] %s29_s16 }
   0x5   :  { %s1612_s17 = scalar_lea.vmem %s30_s16, 20480  ;;  %p1617_p1 = scmp.lt.s32.totalorder %s30_s16, %s30_s16 }
   0x6   :  { %p1613_p0 = scmp.ne.s32.totalorder %s30_s16, %s1612_s17  ;;  %p1618_p2 = scmp.lt.s32.totalorder %s1612_s17, %s1612_s17 }
   0x8   :  { %p1619_p3 = por %p1618_p2, %p1617_p1 }
   0xa   :  { %p1620_p4 = pnand %p1619_p3, %p1613_p0 }
   0xc   :  { %1623 = shalt.err (!%p1620_p4)
}
   0xd   :  { %s1713_s18 = smov 128   ;;  %s1714_s19 = smov 8  }
   0xe   :  { %35 = dma.hbm_to_vmem [thread:$0]  %s1958_s1, 20480, %s30_s16, [#allocation8], %s1713_s18, %s1713_s18, %s1714_s19  }
   0xf   :  { %s1715_s22 = smov [#allocation4]   ;;  %s1716_s24 = smov [#allocation9]  }
  0x10   :  { %s20_s23 = sshll.u32 %s1715_s22, 4  ;;  %s41_s25 = sshll.u32 %s1716_s24, 4  ;;  %s21_s23 = int_to_ptr.vmem [resolvable:$true] %s20_s23  ;;  %s42_s25 = int_to_ptr.vmem [resolvable:$true] %s41_s25 }
  0x11   :  { %s1632_s26 = scalar_lea.vmem %s21_s23, 128  ;;  %p1637_p6 = scmp.lt.s32.totalorder %s21_s23, %s21_s23 }
  0x12   :  { %p1633_p5 = scmp.ne.s32.totalorder %s21_s23, %s1632_s26  ;;  %p1638_p7 = scmp.lt.s32.totalorder %s1632_s26, %s1632_s26 }
  0x14   :  { %p1639_p8 = por %p1638_p7, %p1637_p6 }
  0x16   :  { %p1640_p9 = pnand %p1639_p8, %p1633_p5 }
  0x18   :  { %1643 = shalt.err (!%p1640_p9)
}
  0x19   :  { %23 = dma.hbm_to_vmem [thread:$0]  %s1957_s0, 128, %s21_s23, [#allocation5]  }
  0x1a   :  { %s1652_s29 = scalar_lea.vmem %s42_s25, 160  ;;  %p1657_p11 = scmp.lt.s32.totalorder %s42_s25, %s42_s25 }
  0x1b   :  { %p1653_p10 = scmp.ne.s32.totalorder %s42_s25, %s1652_s29  ;;  %p1658_p12 = scmp.lt.s32.totalorder %s1652_s29, %s1652_s29 }
  0x1d   :  { %p1659_p13 = por %p1658_p12, %p1657_p11 }
  0x1f   :  { %p1660_p0 = pnand %p1659_p13, %p1653_p10 }
  0x21   :  { %1663 = shalt.err (!%p1660_p0)
}
  0x22   :  { %s1717_s1 = smov 16   ;;  %s1718_s30 = smov 1  }
  0x23   :  { %47 = dma.hbm_to_vmem [thread:$0]  %s1959_s2, 160, %s42_s25, [#allocation8], %s1717_s1, %s1717_s1, %s1718_s30  }
  0x24   :  { %1704 = dma.done.wait [#allocation5], 128  }
  0x25   :  { %1705 = vsyncadd [#allocation5], 4294967168 }
  0x26   :  { %1706 = dma.done.wait [#allocation8], 20640  }
  0x27   :  { %1707 = vsyncadd [#allocation8], 4294946656  ;;  %v1719_v0 = vmov 0.0   ;;  %vm1720_vm0 = vmmov 0   ;;  %v75_v1 = vld [vmem:[#allocation7 + $0x78] sm:$0xff]  ;;  %v74_v2 = vld [vmem:[#allocation7 + $0x70] sm:$0xff] }
  0x28   :  { %1243 = vmatprep.subr.mxu0 %v1719_v0  ;;  %1275 = vmatprep.mubr.msk.f32.mxu0 %vm1720_vm0, %v1719_v0  ;;  %v73_v3 = vld [vmem:[#allocation7 + $0x68] sm:$0xff]  ;;  %v72_v4 = vld [vmem:[#allocation7 + $0x60] sm:$0xff]  ;;  %v172_v5 = vld [vmem:[#allocation7 + $0xf8] sm:$0xff]  ;;  %s1721_s0 = smov [#allocation11]  }
  0x29   :  { %1278 = vmatprep.subr.mxu1 %v1719_v0  ;;  %1310 = vmatprep.mubr.msk.f32.mxu1 %vm1720_vm0, %v1719_v0  ;;  %v71_v6 = vld [vmem:[#allocation7 + $0x58] sm:$0xff]  ;;  %v171_v7 = vld [vmem:[#allocation7 + $0xf0] sm:$0xff]  ;;  %v170_v8 = vld [vmem:[#allocation7 + $0xe8] sm:$0xff]  ;;  %s1046_s2 = sshll.u32 %s1721_s0, 4  ;;  %s1047_s2 = int_to_ptr.vmem [resolvable:$true] %s1046_s2 }
  0x2a   :  { %1244 = vmatpush3.msra.mxu0 %v75_v1  ;;  %1279 = vmatpush3.msra.mxu1 %v172_v5  ;;  %v70_v9 = vld [vmem:[#allocation7 + $0x50] sm:$0xff]  ;;  %v169_v10 = vld [vmem:[#allocation7 + $0xe0] sm:$0xff]  ;;  %v69_v11 = vld [vmem:[#allocation7 + $0x48] sm:$0xff]  ;;  %s1664_s7 = scalar_lea.vmem %s1047_s2, 256  ;;  %p1669_p2 = scmp.lt.s32.totalorder %s1047_s2, %s1047_s2 }
  0x2b   :  { %1245 = vmatprep.subr.mxu0 %v1719_v0  ;;  %1280 = vmatprep.subr.mxu1 %v1719_v0  ;;  %v168_v12 = vld [vmem:[#allocation7 + $0xd8] sm:$0xff]  ;;  %v68_v13 = vld [vmem:[#allocation7 + $0x40] sm:$0xff]  ;;  %v167_v14 = vld [vmem:[#allocation7 + $0xd0] sm:$0xff]  ;;  %p1665_p1 = scmp.ne.s32.totalorder %s1047_s2, %s1664_s7  ;;  %p1670_p3 = scmp.lt.s32.totalorder %s1664_s7, %s1664_s7 }
  0x2c   :  { %1246 = vmatpush3.msra.mxu0 %v74_v2  ;;  %1281 = vmatpush3.msra.mxu1 %v171_v7  ;;  %v67_v15 = vld [vmem:[#allocation7 + $0x38] sm:$0xff]  ;;  %v166_v16 = vld [vmem:[#allocation7 + $0xc8] sm:$0xff]  ;;  %v66_v17 = vld [vmem:[#allocation7 + $0x30] sm:$0xff] }
  0x2d   :  { %1247 = vmatprep.subr.mxu0 %v1719_v0  ;;  %1282 = vmatprep.subr.mxu1 %v1719_v0  ;;  %v165_v18 = vld [vmem:[#allocation7 + $0xc0] sm:$0xff]  ;;  %v65_v19 = vld [vmem:[#allocation7 + $0x28] sm:$0xff]  ;;  %v164_v20 = vld [vmem:[#allocation7 + $0xb8] sm:$0xff]  ;;  %p1671_p4 = por %p1670_p3, %p1669_p2 }
  0x2e   :  { %1248 = vmatpush3.msra.mxu0 %v73_v3  ;;  %1283 = vmatpush3.msra.mxu1 %v170_v8  ;;  %v64_v21 = vld [vmem:[#allocation7 + $0x20] sm:$0xff]  ;;  %v163_v22 = vld [vmem:[#allocation7 + $0xb0] sm:$0xff]  ;;  %v63_v23 = vld [vmem:[#allocation7 + $0x18] sm:$0xff] }
  0x2f   :  { %1249 = vmatprep.subr.mxu0 %v1719_v0  ;;  %1284 = vmatprep.subr.mxu1 %v1719_v0  ;;  %v162_v24 = vld [vmem:[#allocation7 + $0xa8] sm:$0xff]  ;;  %v62_v25 = vld [vmem:[#allocation7 + $0x10] sm:$0xff]  ;;  %v161_v26 = vld [vmem:[#allocation7 + $0xa0] sm:$0xff]  ;;  %p1672_p5 = pnand %p1671_p4, %p1665_p1 }
  0x30   :  { %1250 = vmatpush3.msra.mxu0 %v72_v4  ;;  %1285 = vmatpush3.msra.mxu1 %v169_v10  ;;  %v61_v27 = vld [vmem:[#allocation7 + $0x8] sm:$0xff]  ;;  %v160_v28 = vld [vmem:[#allocation7 + $0x98] sm:$0xff]  ;;  %v60_v29 = vld [vmem:[#allocation7] sm:$0xff] }
  0x31   :  { %1251 = vmatprep.subr.mxu0 %v1719_v0  ;;  %1286 = vmatprep.subr.mxu1 %v1719_v0  ;;  %v1791_v30 = vld [vmem:[#allocation4] sm:$0xff]  ;;  %v159_v31 = vld [vmem:[#allocation7 + $0x90] sm:$0xff]  ;;  %v158_v32 = vld [vmem:[#allocation7 + $0x88] sm:$0xff] }
  0x32   :  { %1252 = vmatpush3.msra.mxu0 %v71_v6  ;;  %1287 = vmatpush3.msra.mxu1 %v168_v12  ;;  %v157_v33 = vld [vmem:[#allocation7 + $0x80] sm:$0xff]  ;;  %v268_v34 = vld [vmem:[#allocation7 + $0x178] sm:$0xff]  ;;  %v267_v35 = vld [vmem:[#allocation7 + $0x170] sm:$0xff] }
  0x33   :  { %1253 = vmatprep.subr.mxu0 %v1719_v0  ;;  %1288 = vmatprep.subr.mxu1 %v1719_v0  ;;  %v266_v36 = vld [vmem:[#allocation7 + $0x168] sm:$0xff]  ;;  %v265_v37 = vld [vmem:[#allocation7 + $0x160] sm:$0xff]  ;;  %v264_v38 = vld [vmem:[#allocation7 + $0x158] sm:$0xff] }
  0x34   :  { %1254 = vmatpush3.msra.mxu0 %v70_v9  ;;  %1289 = vmatpush3.msra.mxu1 %v167_v14  ;;  %v263_v39 = vld [vmem:[#allocation7 + $0x150] sm:$0xff]  ;;  %v262_v40 = vld [vmem:[#allocation7 + $0x148] sm:$0xff]  ;;  %v261_v41 = vld [vmem:[#allocation7 + $0x140] sm:$0xff] }
  0x35   :  { %1255 = vmatprep.subr.mxu0 %v1719_v0  ;;  %1290 = vmatprep.subr.mxu1 %v1719_v0  ;;  %v260_v42 = vld [vmem:[#allocation7 + $0x138] sm:$0xff]  ;;  %v259_v43 = vld [vmem:[#allocation7 + $0x130] sm:$0xff]  ;;  %v258_v44 = vld [vmem:[#allocation7 + $0x128] sm:$0xff] }
  0x36   :  { %1256 = vmatpush3.msra.mxu0 %v69_v11  ;;  %1291 = vmatpush3.msra.mxu1 %v166_v16  ;;  %v257_v45 = vld [vmem:[#allocation7 + $0x120] sm:$0xff]  ;;  %v256_v46 = vld [vmem:[#allocation7 + $0x118] sm:$0xff]  ;;  %v255_v47 = vld [vmem:[#allocation7 + $0x110] sm:$0xff] }
  0x37   :  { %1257 = vmatprep.subr.mxu0 %v1719_v0  ;;  %1292 = vmatprep.subr.mxu1 %v1719_v0  ;;  %v1063_v48 = vld [vmem:[#allocation9] ss:$0 sm:$0xff]  ;;  %v254_v54 = vld [vmem:[#allocation7 + $0x108] sm:$0xff]  ;;  %v364_v56 = vld [vmem:[#allocation7 + $0x1f8] sm:$0xff] }
  0x38   :  { %1258 = vmatpush3.msra.mxu0 %v68_v13  ;;  %1293 = vmatpush3.msra.mxu1 %v165_v18  ;;  %v253_v55 = vld [vmem:[#allocation7 + $0x100] sm:$0xff]  ;;  %v363_v57 = vld [vmem:[#allocation7 + $0x1f0] sm:$0xff]  ;;  %v362_v58 = vld [vmem:[#allocation7 + $0x1e8] sm:$0xff] }
  0x39   :  { %1259 = vmatprep.subr.mxu0 %v1719_v0  ;;  %1294 = vmatprep.subr.mxu1 %v1719_v0  ;;  %v361_v59 = vld [vmem:[#allocation7 + $0x1e0] sm:$0xff]  ;;  %v360_v60 = vld [vmem:[#allocation7 + $0x1d8] sm:$0xff]  ;;  %v359_v61 = vld [vmem:[#allocation7 + $0x1d0] sm:$0xff] }
  0x3a   :  { %1260 = vmatpush3.msra.mxu0 %v67_v15  ;;  %1295 = vmatpush3.msra.mxu1 %v164_v20  ;;  %v358_v62 = vld [vmem:[#allocation7 + $0x1c8] sm:$0xff]  ;;  %v357_v63 = vld [vmem:[#allocation7 + $0x1c0] sm:$0xff]  ;;  %v356_v1 = vld [vmem:[#allocation7 + $0x1b8] sm:$0xff] }
  0x3b   :  { %1261 = vmatprep.subr.mxu0 %v1719_v0  ;;  %1296 = vmatprep.subr.mxu1 %v1719_v0  ;;  %v355_v2 = vld [vmem:[#allocation7 + $0x1b0] sm:$0xff]  ;;  %v354_v3 = vld [vmem:[#allocation7 + $0x1a8] sm:$0xff]  ;;  %v353_v4 = vld [vmem:[#allocation7 + $0x1a0] sm:$0xff] }
  0x3c   :  { %1262 = vmatpush3.msra.mxu0 %v66_v17  ;;  %1297 = vmatpush3.msra.mxu1 %v163_v22  ;;  %v352_v5 = vld [vmem:[#allocation7 + $0x198] sm:$0xff]  ;;  %v1064_v6 = vld [vmem:[#allocation9 + $0x1] ss:$0 sm:$0xff]  ;;  %v351_v10 = vld [vmem:[#allocation7 + $0x190] sm:$0xff] }
  0x3d   :  { %1263 = vmatprep.subr.mxu0 %v1719_v0  ;;  %1298 = vmatprep.subr.mxu1 %v1719_v0  ;;  %v350_v11 = vld [vmem:[#allocation7 + $0x188] sm:$0xff]  ;;  %v349_v12 = vld [vmem:[#allocation7 + $0x180] sm:$0xff]  ;;  %v465_v13 = vld [vmem:[#allocation7 + $0x278] sm:$0xff] }
  0x3e   :  { %1264 = vmatpush3.msra.mxu0 %v65_v19  ;;  %1299 = vmatpush3.msra.mxu1 %v162_v24  ;;  %v464_v14 = vld [vmem:[#allocation7 + $0x270] sm:$0xff]  ;;  %v463_v15 = vld [vmem:[#allocation7 + $0x268] sm:$0xff]  ;;  %v462_v16 = vld [vmem:[#allocation7 + $0x260] sm:$0xff] }
  0x3f   :  { %1265 = vmatprep.subr.mxu0 %v1719_v0  ;;  %1300 = vmatprep.subr.mxu1 %v1719_v0  ;;  %v461_v17 = vld [vmem:[#allocation7 + $0x258] sm:$0xff]  ;;  %v460_v18 = vld [vmem:[#allocation7 + $0x250] sm:$0xff]  ;;  %v459_v19 = vld [vmem:[#allocation7 + $0x248] sm:$0xff] }
  0x40   :  { %1266 = vmatpush3.msra.mxu0 %v64_v21  ;;  %1301 = vmatpush3.msra.mxu1 %v161_v26  ;;  %v458_v20 = vld [vmem:[#allocation7 + $0x240] sm:$0xff]  ;;  %v457_v21 = vld [vmem:[#allocation7 + $0x238] sm:$0xff]  ;;  %v456_v22 = vld [vmem:[#allocation7 + $0x230] sm:$0xff] }
  0x41   :  { %1267 = vmatprep.subr.mxu0 %v1719_v0  ;;  %1302 = vmatprep.subr.mxu1 %v1719_v0  ;;  %v454_v24 = vld [vmem:[#allocation7 + $0x220] sm:$0xff] }
  0x42   :  { %1268 = vmatpush3.msra.mxu0 %v63_v23  ;;  %1303 = vmatpush3.msra.mxu1 %v160_v28  ;;  %v455_v23 = vld [vmem:[#allocation7 + $0x228] sm:$0xff]  ;;  %v1065_v26 = vld [vmem:[#allocation9 + $0x2] ss:$0 sm:$0xff] }
  0x43   :  { %1269 = vmatprep.subr.mxu0 %v1719_v0  ;;  %1304 = vmatprep.subr.mxu1 %v1719_v0 }
  0x44   :  { %1270 = vmatpush3.msra.mxu0 %v62_v25  ;;  %1305 = vmatpush3.msra.mxu1 %v159_v31  ;;  %v453_v25 = vld [vmem:[#allocation7 + $0x218] sm:$0xff] }
  0x45   :  { %1271 = vmatprep.subr.mxu0 %v1719_v0  ;;  %1306 = vmatprep.subr.mxu1 %v1719_v0 }
  0x46   :  { %1272 = vmatpush3.msra.mxu0 %v61_v27  ;;  %1307 = vmatpush3.msra.mxu1 %v158_v32  ;;  %v452_v32 = vld [vmem:[#allocation7 + $0x210] sm:$0xff] }
  0x47   :  { %1273 = vmatprep.subr.mxu0 %v1719_v0  ;;  %1308 = vmatprep.subr.mxu1 %v1719_v0 }
  0x48   :  { %1274 = vmatpush3.msra.mxu0 %v60_v29  ;;  %1309 = vmatpush3.msra.mxu1 %v157_v33  ;;  %v451_v33 = vld [vmem:[#allocation7 + $0x208] sm:$0xff] }
  0x49   :  { %1276 = vmatmul.mubr.f32.vlgmr.msra.gmra.mxu0 %v1791_v30  ;;  %1313 = vmatprep.subr.mxu0 %v1719_v0 }
  0x4a   :  { %1345 = vmatprep.mubr.msk.f32.mxu0 %vm1720_vm0, %v1719_v0  ;;  %1348 = vmatprep.subr.mxu1 %v1719_v0 }
  0x4b   :  { %1314 = vmatpush3.msra.mxu0 %v268_v34  ;;  %v450_v34 = vld [vmem:[#allocation7 + $0x200] sm:$0xff] }
  0x4c   :  { %1315 = vmatprep.subr.mxu0 %v1719_v0 }
  0x4d   :  { %1316 = vmatpush3.msra.mxu0 %v267_v35  ;;  %v563_v35 = vld [vmem:[#allocation7 + $0x2f8] sm:$0xff] }
  0x4e   :  { %1317 = vmatprep.subr.mxu0 %v1719_v0 }
  0x4f   :  { %1318 = vmatpush3.msra.mxu0 %v266_v36  ;;  %v562_v36 = vld [vmem:[#allocation7 + $0x2f0] sm:$0xff] }
  0x50   :  { %1319 = vmatprep.subr.mxu0 %v1719_v0 }
  0x51   :  { %1320 = vmatpush3.msra.mxu0 %v265_v37  ;;  %v561_v37 = vld [vmem:[#allocation7 + $0x2e8] sm:$0xff] }
  0x52   :  { %1321 = vmatprep.subr.mxu0 %v1719_v0 }
  0x53   :  { %1322 = vmatpush3.msra.mxu0 %v264_v38  ;;  %v560_v38 = vld [vmem:[#allocation7 + $0x2e0] sm:$0xff] }
  0x54   :  { %1323 = vmatprep.subr.mxu0 %v1719_v0 }
  0x55   :  { %1324 = vmatpush3.msra.mxu0 %v263_v39  ;;  %v559_v39 = vld [vmem:[#allocation7 + $0x2d8] sm:$0xff] }
  0x56   :  { %1325 = vmatprep.subr.mxu0 %v1719_v0 }
  0x57   :  { %1326 = vmatpush3.msra.mxu0 %v262_v40  ;;  %v558_v40 = vld [vmem:[#allocation7 + $0x2d0] sm:$0xff] }
  0x58   :  { %1327 = vmatprep.subr.mxu0 %v1719_v0 }
  0x59   :  { %1328 = vmatpush3.msra.mxu0 %v261_v41  ;;  %v557_v41 = vld [vmem:[#allocation7 + $0x2c8] sm:$0xff] }
  0x5a   :  { %1329 = vmatprep.subr.mxu0 %v1719_v0 }
  0x5b   :  { %1330 = vmatpush3.msra.mxu0 %v260_v42  ;;  %v556_v42 = vld [vmem:[#allocation7 + $0x2c0] sm:$0xff] }
  0x5c   :  { %1331 = vmatprep.subr.mxu0 %v1719_v0 }
  0x5d   :  { %1332 = vmatpush3.msra.mxu0 %v259_v43  ;;  %v555_v43 = vld [vmem:[#allocation7 + $0x2b8] sm:$0xff] }
  0x5e   :  { %1333 = vmatprep.subr.mxu0 %v1719_v0 }
  0x5f   :  { %1334 = vmatpush3.msra.mxu0 %v258_v44  ;;  %v554_v44 = vld [vmem:[#allocation7 + $0x2b0] sm:$0xff] }
  0x60   :  { %1335 = vmatprep.subr.mxu0 %v1719_v0 }
  0x61   :  { %1336 = vmatpush3.msra.mxu0 %v257_v45  ;;  %v553_v45 = vld [vmem:[#allocation7 + $0x2a8] sm:$0xff] }
  0x62   :  { %1337 = vmatprep.subr.mxu0 %v1719_v0 }
  0x63   :  { %1338 = vmatpush3.msra.mxu0 %v256_v46  ;;  %v552_v46 = vld [vmem:[#allocation7 + $0x2a0] sm:$0xff] }
  0x64   :  { %1339 = vmatprep.subr.mxu0 %v1719_v0 }
  0x65   :  { %1340 = vmatpush3.msra.mxu0 %v255_v47  ;;  %v551_v47 = vld [vmem:[#allocation7 + $0x298] sm:$0xff] }
  0x66   :  { %1341 = vmatprep.subr.mxu0 %v1719_v0 }
  0x67   :  { %1342 = vmatpush3.msra.mxu0 %v254_v54  ;;  %v549_v54 = vld [vmem:[#allocation7 + $0x288] sm:$0xff] }
  0x68   :  { %1343 = vmatprep.subr.mxu0 %v1719_v0 }
  0x69   :  { %1344 = vmatpush3.msra.mxu0 %v253_v55  ;;  %v548_v55 = vld [vmem:[#allocation7 + $0x280] sm:$0xff] }
  0x6a   :  { %1383 = vmatprep.subr.mxu0 %v1719_v0 }
 0x109   :  { %v149_v49 = vpop.f32.mrf.mxu0 }
 0x10a   :  { %v150_v50 = vadd.f32 %v1063_v48, %v149_v49  ;;  %v1066_v48 = vld [vmem:[#allocation9 + $0x3] ss:$0 sm:$0xff] }
 0x10b   :  { %v1277_v51 = vpop.f32.mrf.mxu0 }
 0x10c   :  { %v154_v52 = vmul.f32 0.01, %v150_v50  ;;  %vm153_vm1 = vcmp.gt.f32.partialorder %v150_v50, 0.0 }
 0x10e   :  { %v155_v53 = vsel %vm153_vm1, %v150_v50, %v154_v52 }
 0x10f   :  { %1311 = vmatmul.mubr.f32.vlgmr.msra.gmra.mxu1 %v155_v53  ;;  %v550_v53 = vld [vmem:[#allocation7 + $0x290] sm:$0xff] }
 0x110   :  { %1380 = vmatprep.mubr.msk.f32.mxu1 %vm1720_vm0, %v1719_v0  ;;  %1349 = vmatpush3.msra.mxu1 %v364_v56  ;;  %v660_v56 = vld [vmem:[#allocation7 + $0x378] sm:$0xff] }
 0x111   :  { %1350 = vmatprep.subr.mxu1 %v1719_v0 }
 0x112   :  { %1351 = vmatpush3.msra.mxu1 %v363_v57  ;;  %v659_v57 = vld [vmem:[#allocation7 + $0x370] sm:$0xff] }
 0x113   :  { %1352 = vmatprep.subr.mxu1 %v1719_v0 }
 0x114   :  { %1353 = vmatpush3.msra.mxu1 %v362_v58  ;;  %v657_v58 = vld [vmem:[#allocation7 + $0x360] sm:$0xff] }
 0x115   :  { %1354 = vmatprep.subr.mxu1 %v1719_v0 }
 0x116   :  { %1355 = vmatpush3.msra.mxu1 %v361_v59  ;;  %v656_v59 = vld [vmem:[#allocation7 + $0x358] sm:$0xff] }
 0x117   :  { %1356 = vmatprep.subr.mxu1 %v1719_v0 }
 0x118   :  { %1357 = vmatpush3.msra.mxu1 %v360_v60  ;;  %v655_v60 = vld [vmem:[#allocation7 + $0x350] sm:$0xff] }
 0x119   :  { %1358 = vmatprep.subr.mxu1 %v1719_v0 }
 0x11a   :  { %1359 = vmatpush3.msra.mxu1 %v359_v61  ;;  %v654_v61 = vld [vmem:[#allocation7 + $0x348] sm:$0xff] }
 0x11b   :  { %1360 = vmatprep.subr.mxu1 %v1719_v0 }
 0x11c   :  { %1361 = vmatpush3.msra.mxu1 %v358_v62  ;;  %v653_v62 = vld [vmem:[#allocation7 + $0x340] sm:$0xff] }
 0x11d   :  { %1362 = vmatprep.subr.mxu1 %v1719_v0 }
 0x11e   :  { %1363 = vmatpush3.msra.mxu1 %v357_v63  ;;  %v652_v63 = vld [vmem:[#allocation7 + $0x338] sm:$0xff] }
 0x11f   :  { %1364 = vmatprep.subr.mxu1 %v1719_v0 }
 0x120   :  { %1365 = vmatpush3.msra.mxu1 %v356_v1  ;;  %v651_v1 = vld [vmem:[#allocation7 + $0x330] sm:$0xff] }
 0x121   :  { %1366 = vmatprep.subr.mxu1 %v1719_v0 }
 0x122   :  { %1367 = vmatpush3.msra.mxu1 %v355_v2  ;;  %v650_v2 = vld [vmem:[#allocation7 + $0x328] sm:$0xff] }
 0x123   :  { %1368 = vmatprep.subr.mxu1 %v1719_v0 }
 0x124   :  { %1369 = vmatpush3.msra.mxu1 %v354_v3  ;;  %v649_v3 = vld [vmem:[#allocation7 + $0x320] sm:$0xff] }
 0x125   :  { %1370 = vmatprep.subr.mxu1 %v1719_v0 }
 0x126   :  { %1371 = vmatpush3.msra.mxu1 %v353_v4  ;;  %v648_v4 = vld [vmem:[#allocation7 + $0x318] sm:$0xff] }
 0x127   :  { %1372 = vmatprep.subr.mxu1 %v1719_v0 }
 0x128   :  { %1373 = vmatpush3.msra.mxu1 %v352_v5  ;;  %v647_v5 = vld [vmem:[#allocation7 + $0x310] sm:$0xff] }
 0x129   :  { %1374 = vmatprep.subr.mxu1 %v1719_v0 }
 0x12a   :  { %1375 = vmatpush3.msra.mxu1 %v351_v10 }
 0x12b   :  { %1376 = vmatprep.subr.mxu1 %v1719_v0 }
 0x12c   :  { %1377 = vmatpush3.msra.mxu1 %v350_v11 }
 0x12d   :  { %1378 = vmatprep.subr.mxu1 %v1719_v0 }
 0x12e   :  { %1379 = vmatpush3.msra.mxu1 %v349_v12  ;;  %v646_v12 = vld [vmem:[#allocation7 + $0x308] sm:$0xff] }
 0x12f   :  { %1418 = vmatprep.subr.mxu1 %v1719_v0 }
 0x1cf   :  { %v247_v7 = vpop.f32.mrf.mxu1 }
 0x1d0   :  { %v248_v8 = vadd.f32 %v1064_v6, %v247_v7  ;;  %v1067_v6 = vld [vmem:[#allocation9 + $0x4] ss:$0 sm:$0xff] }
 0x1d1   :  { %v1312_v9 = vpop.f32.mrf.mxu1 }
 0x1d2   :  { %251 = vst [vmem:[#allocation11] sm:$0xff] %v248_v8  ;;  %1346 = vmatmul.mubr.f32.vlgmr.msra.gmra.mxu0 %v248_v8 }
 0x1d3   :  { %1415 = vmatprep.mubr.msk.f32.mxu0 %vm1720_vm0, %v1719_v0  ;;  %1384 = vmatpush3.msra.mxu0 %v465_v13  ;;  %v645_v13 = vld [vmem:[#allocation7 + $0x300] sm:$0xff] }
 0x1d4   :  { %1385 = vmatprep.subr.mxu0 %v1719_v0 }
 0x1d5   :  { %1386 = vmatpush3.msra.mxu0 %v464_v14  ;;  %v756_v14 = vld [vmem:[#allocation7 + $0x3f8] sm:$0xff] }
 0x1d6   :  { %1387 = vmatprep.subr.mxu0 %v1719_v0 }
 0x1d7   :  { %1388 = vmatpush3.msra.mxu0 %v463_v15  ;;  %v755_v15 = vld [vmem:[#allocation7 + $0x3f0] sm:$0xff] }
 0x1d8   :  { %1389 = vmatprep.subr.mxu0 %v1719_v0 }
 0x1d9   :  { %1390 = vmatpush3.msra.mxu0 %v462_v16  ;;  %v754_v16 = vld [vmem:[#allocation7 + $0x3e8] sm:$0xff] }
 0x1da   :  { %1391 = vmatprep.subr.mxu0 %v1719_v0 }
 0x1db   :  { %1392 = vmatpush3.msra.mxu0 %v461_v17  ;;  %v753_v17 = vld [vmem:[#allocation7 + $0x3e0] sm:$0xff] }
 0x1dc   :  { %1393 = vmatprep.subr.mxu0 %v1719_v0 }
 0x1dd   :  { %1394 = vmatpush3.msra.mxu0 %v460_v18  ;;  %v752_v18 = vld [vmem:[#allocation7 + $0x3d8] sm:$0xff] }
 0x1de   :  { %1395 = vmatprep.subr.mxu0 %v1719_v0 }
 0x1df   :  { %1396 = vmatpush3.msra.mxu0 %v459_v19  ;;  %v751_v19 = vld [vmem:[#allocation7 + $0x3d0] sm:$0xff] }
 0x1e0   :  { %1397 = vmatprep.subr.mxu0 %v1719_v0 }
 0x1e1   :  { %1398 = vmatpush3.msra.mxu0 %v458_v20  ;;  %v750_v20 = vld [vmem:[#allocation7 + $0x3c8] sm:$0xff] }
 0x1e2   :  { %1399 = vmatprep.subr.mxu0 %v1719_v0 }
 0x1e3   :  { %1400 = vmatpush3.msra.mxu0 %v457_v21  ;;  %v749_v21 = vld [vmem:[#allocation7 + $0x3c0] sm:$0xff] }
 0x1e4   :  { %1401 = vmatprep.subr.mxu0 %v1719_v0 }
 0x1e5   :  { %1402 = vmatpush3.msra.mxu0 %v456_v22  ;;  %v748_v22 = vld [vmem:[#allocation7 + $0x3b8] sm:$0xff] }
 0x1e6   :  { %1403 = vmatprep.subr.mxu0 %v1719_v0 }
 0x1e7   :  { %1404 = vmatpush3.msra.mxu0 %v455_v23  ;;  %v747_v23 = vld [vmem:[#allocation7 + $0x3b0] sm:$0xff] }
 0x1e8   :  { %1405 = vmatprep.subr.mxu0 %v1719_v0 }
 0x1e9   :  { %1406 = vmatpush3.msra.mxu0 %v454_v24  ;;  %v746_v24 = vld [vmem:[#allocation7 + $0x3a8] sm:$0xff] }
 0x1ea   :  { %1407 = vmatprep.subr.mxu0 %v1719_v0 }
 0x1eb   :  { %1408 = vmatpush3.msra.mxu0 %v453_v25  ;;  %v745_v25 = vld [vmem:[#allocation7 + $0x3a0] sm:$0xff] }
 0x1ec   :  { %1409 = vmatprep.subr.mxu0 %v1719_v0 }
 0x1ed   :  { %1410 = vmatpush3.msra.mxu0 %v452_v32  ;;  %v743_v32 = vld [vmem:[#allocation7 + $0x390] sm:$0xff] }
 0x1ee   :  { %1411 = vmatprep.subr.mxu0 %v1719_v0 }
 0x1ef   :  { %1412 = vmatpush3.msra.mxu0 %v451_v33  ;;  %v742_v33 = vld [vmem:[#allocation7 + $0x388] sm:$0xff] }
 0x1f0   :  { %1413 = vmatprep.subr.mxu0 %v1719_v0 }
 0x1f1   :  { %1414 = vmatpush3.msra.mxu0 %v450_v34  ;;  %v741_v34 = vld [vmem:[#allocation7 + $0x380] sm:$0xff] }
 0x1f2   :  { %1453 = vmatprep.subr.mxu0 %v1719_v0 }
 0x292   :  { %v343_v27 = vpop.f32.mrf.mxu0 }
 0x293   :  { %v344_v28 = vadd.f32 %v1065_v26, %v343_v27  ;;  %v744_v26 = vld [vmem:[#allocation7 + $0x398] sm:$0xff]  ;;  %v1068_v27 = vld [vmem:[#allocation9 + $0x5] ss:$0 sm:$0xff] }
 0x294   :  { %v1347_v29 = vpop.f32.mrf.mxu0 }
 0x295   :  { %v347_v31 = vmax.f32 %v344_v28, 0.0 }
 0x297   :  { %1381 = vmatmul.mubr.f32.vlgmr.msra.gmra.mxu1 %v347_v31 }
 0x298   :  { %1450 = vmatprep.mubr.msk.f32.mxu1 %vm1720_vm0, %v1719_v0  ;;  %1419 = vmatpush3.msra.mxu1 %v563_v35  ;;  %v855_v35 = vld [vmem:[#allocation7 + $0x478] sm:$0xff] }
 0x299   :  { %1420 = vmatprep.subr.mxu1 %v1719_v0 }
 0x29a   :  { %1421 = vmatpush3.msra.mxu1 %v562_v36  ;;  %v854_v36 = vld [vmem:[#allocation7 + $0x470] sm:$0xff] }
 0x29b   :  { %1422 = vmatprep.subr.mxu1 %v1719_v0 }
 0x29c   :  { %1423 = vmatpush3.msra.mxu1 %v561_v37  ;;  %v853_v37 = vld [vmem:[#allocation7 + $0x468] sm:$0xff] }
 0x29d   :  { %1424 = vmatprep.subr.mxu1 %v1719_v0 }
 0x29e   :  { %1425 = vmatpush3.msra.mxu1 %v560_v38  ;;  %v852_v38 = vld [vmem:[#allocation7 + $0x460] sm:$0xff] }
 0x29f   :  { %1426 = vmatprep.subr.mxu1 %v1719_v0 }
 0x2a0   :  { %1427 = vmatpush3.msra.mxu1 %v559_v39  ;;  %v851_v39 = vld [vmem:[#allocation7 + $0x458] sm:$0xff] }
 0x2a1   :  { %1428 = vmatprep.subr.mxu1 %v1719_v0 }
 0x2a2   :  { %1429 = vmatpush3.msra.mxu1 %v558_v40  ;;  %v850_v40 = vld [vmem:[#allocation7 + $0x450] sm:$0xff] }
 0x2a3   :  { %1430 = vmatprep.subr.mxu1 %v1719_v0 }
 0x2a4   :  { %1431 = vmatpush3.msra.mxu1 %v557_v41  ;;  %v849_v41 = vld [vmem:[#allocation7 + $0x448] sm:$0xff] }
 0x2a5   :  { %1432 = vmatprep.subr.mxu1 %v1719_v0 }
 0x2a6   :  { %1433 = vmatpush3.msra.mxu1 %v556_v42  ;;  %v848_v42 = vld [vmem:[#allocation7 + $0x440] sm:$0xff] }
 0x2a7   :  { %1434 = vmatprep.subr.mxu1 %v1719_v0 }
 0x2a8   :  { %1435 = vmatpush3.msra.mxu1 %v555_v43  ;;  %v847_v43 = vld [vmem:[#allocation7 + $0x438] sm:$0xff] }
 0x2a9   :  { %1436 = vmatprep.subr.mxu1 %v1719_v0 }
 0x2aa   :  { %1437 = vmatpush3.msra.mxu1 %v554_v44  ;;  %v846_v44 = vld [vmem:[#allocation7 + $0x430] sm:$0xff] }
 0x2ab   :  { %1438 = vmatprep.subr.mxu1 %v1719_v0 }
 0x2ac   :  { %1439 = vmatpush3.msra.mxu1 %v553_v45  ;;  %v845_v45 = vld [vmem:[#allocation7 + $0x428] sm:$0xff] }
 0x2ad   :  { %1440 = vmatprep.subr.mxu1 %v1719_v0 }
 0x2ae   :  { %1441 = vmatpush3.msra.mxu1 %v552_v46  ;;  %v844_v46 = vld [vmem:[#allocation7 + $0x420] sm:$0xff] }
 0x2af   :  { %1442 = vmatprep.subr.mxu1 %v1719_v0 }
 0x2b0   :  { %1443 = vmatpush3.msra.mxu1 %v551_v47  ;;  %v843_v47 = vld [vmem:[#allocation7 + $0x418] sm:$0xff] }
 0x2b1   :  { %1444 = vmatprep.subr.mxu1 %v1719_v0 }
 0x2b2   :  { %1445 = vmatpush3.msra.mxu1 %v550_v53 }
 0x2b3   :  { %1446 = vmatprep.subr.mxu1 %v1719_v0 }
 0x2b4   :  { %1447 = vmatpush3.msra.mxu1 %v549_v54  ;;  %v842_v54 = vld [vmem:[#allocation7 + $0x410] sm:$0xff] }
 0x2b5   :  { %1448 = vmatprep.subr.mxu1 %v1719_v0 }
 0x2b6   :  { %1449 = vmatpush3.msra.mxu1 %v548_v55  ;;  %v841_v55 = vld [vmem:[#allocation7 + $0x408] sm:$0xff] }
 0x2b7   :  { %1488 = vmatprep.subr.mxu1 %v1719_v0 }
 0x357   :  { %v439_v49 = vpop.f32.mrf.mxu1 }
 0x358   :  { %v440_v50 = vadd.f32 %v1066_v48, %v439_v49  ;;  %v1069_v48 = vld [vmem:[#allocation9 + $0x6] ss:$0 sm:$0xff] }
 0x359   :  { %v1382_v51 = vpop.f32.mrf.mxu1 }
 0x35a   :  { %v1871_v52 = vadd.f32 %v440_v50, %v1791_v30  ;;  %v658_v30 = vld [vmem:[#allocation7 + $0x368] sm:$0xff] }
 0x35c   :  { %1416 = vmatmul.mubr.f32.vlgmr.msra.gmra.mxu0 %v1871_v52 }
 0x35d   :  { %1485 = vmatprep.mubr.msk.f32.mxu0 %vm1720_vm0, %v1719_v0  ;;  %1454 = vmatpush3.msra.mxu0 %v660_v56  ;;  %v840_v56 = vld [vmem:[#allocation7 + $0x400] sm:$0xff] }
 0x35e   :  { %1455 = vmatprep.subr.mxu0 %v1719_v0 }
 0x35f   :  { %1456 = vmatpush3.msra.mxu0 %v659_v57  ;;  %v951_v57 = vld [vmem:[#allocation7 + $0x4f8] sm:$0xff] }
 0x360   :  { %1457 = vmatprep.subr.mxu0 %v1719_v0 }
 0x361   :  { %1458 = vmatpush3.msra.mxu0 %v658_v30  ;;  %v950_v30 = vld [vmem:[#allocation7 + $0x4f0] sm:$0xff] }
 0x362   :  { %1459 = vmatprep.subr.mxu0 %v1719_v0 }
 0x363   :  { %1460 = vmatpush3.msra.mxu0 %v657_v58  ;;  %v949_v58 = vld [vmem:[#allocation7 + $0x4e8] sm:$0xff] }
 0x364   :  { %1461 = vmatprep.subr.mxu0 %v1719_v0 }
 0x365   :  { %1462 = vmatpush3.msra.mxu0 %v656_v59  ;;  %v948_v59 = vld [vmem:[#allocation7 + $0x4e0] sm:$0xff] }
 0x366   :  { %1463 = vmatprep.subr.mxu0 %v1719_v0 }
 0x367   :  { %1464 = vmatpush3.msra.mxu0 %v655_v60  ;;  %v947_v60 = vld [vmem:[#allocation7 + $0x4d8] sm:$0xff] }
 0x368   :  { %1465 = vmatprep.subr.mxu0 %v1719_v0 }
 0x369   :  { %1466 = vmatpush3.msra.mxu0 %v654_v61  ;;  %v946_v61 = vld [vmem:[#allocation7 + $0x4d0] sm:$0xff] }
 0x36a   :  { %1467 = vmatprep.subr.mxu0 %v1719_v0 }
 0x36b   :  { %1468 = vmatpush3.msra.mxu0 %v653_v62  ;;  %v945_v62 = vld [vmem:[#allocation7 + $0x4c8] sm:$0xff] }
 0x36c   :  { %1469 = vmatprep.subr.mxu0 %v1719_v0 }
 0x36d   :  { %1470 = vmatpush3.msra.mxu0 %v652_v63  ;;  %v944_v63 = vld [vmem:[#allocation7 + $0x4c0] sm:$0xff] }
 0x36e   :  { %1471 = vmatprep.subr.mxu0 %v1719_v0 }
 0x36f   :  { %1472 = vmatpush3.msra.mxu0 %v651_v1  ;;  %v943_v1 = vld [vmem:[#allocation7 + $0x4b8] sm:$0xff] }
 0x370   :  { %1473 = vmatprep.subr.mxu0 %v1719_v0 }
 0x371   :  { %1474 = vmatpush3.msra.mxu0 %v650_v2  ;;  %v942_v2 = vld [vmem:[#allocation7 + $0x4b0] sm:$0xff] }
 0x372   :  { %1475 = vmatprep.subr.mxu0 %v1719_v0 }
 0x373   :  { %1476 = vmatpush3.msra.mxu0 %v649_v3  ;;  %v941_v3 = vld [vmem:[#allocation7 + $0x4a8] sm:$0xff] }
 0x374   :  { %1477 = vmatprep.subr.mxu0 %v1719_v0 }
 0x375   :  { %1478 = vmatpush3.msra.mxu0 %v648_v4  ;;  %v940_v4 = vld [vmem:[#allocation7 + $0x4a0] sm:$0xff] }
 0x376   :  { %1479 = vmatprep.subr.mxu0 %v1719_v0 }
 0x377   :  { %1480 = vmatpush3.msra.mxu0 %v647_v5  ;;  %v939_v5 = vld [vmem:[#allocation7 + $0x498] sm:$0xff] }
 0x378   :  { %1481 = vmatprep.subr.mxu0 %v1719_v0 }
 0x379   :  { %1482 = vmatpush3.msra.mxu0 %v646_v12  ;;  %v937_v12 = vld [vmem:[#allocation7 + $0x488] sm:$0xff] }
 0x37a   :  { %1483 = vmatprep.subr.mxu0 %v1719_v0 }
 0x37b   :  { %1484 = vmatpush3.msra.mxu0 %v645_v13  ;;  %v936_v13 = vld [vmem:[#allocation7 + $0x480] sm:$0xff] }
 0x37c   :  { %1523 = vmatprep.subr.mxu0 %v1719_v0 }
 0x41c   :  { %v540_v7 = vpop.f32.mrf.mxu0 }
 0x41d   :  { %v541_v8 = vadd.f32 %v1067_v6, %v540_v7  ;;  %v1070_v6 = vld [vmem:[#allocation9 + $0x7] ss:$0 sm:$0xff] }
 0x41e   :  { %v1417_v9 = vpop.f32.mrf.mxu0 }
 0x41f   :  { %vm544_vm2 = vcmp.gt.f32.partialorder %v541_v8, 0.0  ;;  %v545_v10 = vmul.f32 0.01, %v541_v8 }
 0x421   :  { %v546_v11 = vsel %vm544_vm2, %v541_v8, %v545_v10 }
 0x422   :  { %1451 = vmatmul.mubr.f32.vlgmr.msra.gmra.mxu1 %v546_v11  ;;  %v938_v11 = vld [vmem:[#allocation7 + $0x490] sm:$0xff] }
 0x423   :  { %1520 = vmatprep.mubr.msk.f32.mxu1 %vm1720_vm0, %v1719_v0  ;;  %1489 = vmatpush3.msra.mxu1 %v756_v14  ;;  %v1071_v14 = vld [vmem:[#allocation9 + $0x8] ss:$0 sm:$0xff] }
 0x424   :  { %1490 = vmatprep.subr.mxu1 %v1719_v0 }
 0x425   :  { %1491 = vmatpush3.msra.mxu1 %v755_v15 }
 0x426   :  { %1492 = vmatprep.subr.mxu1 %v1719_v0 }
 0x427   :  { %1493 = vmatpush3.msra.mxu1 %v754_v16 }
 0x428   :  { %1494 = vmatprep.subr.mxu1 %v1719_v0 }
 0x429   :  { %1495 = vmatpush3.msra.mxu1 %v753_v17 }
 0x42a   :  { %1496 = vmatprep.subr.mxu1 %v1719_v0 }
 0x42b   :  { %1497 = vmatpush3.msra.mxu1 %v752_v18 }
 0x42c   :  { %1498 = vmatprep.subr.mxu1 %v1719_v0 }
 0x42d   :  { %1499 = vmatpush3.msra.mxu1 %v751_v19 }
 0x42e   :  { %1500 = vmatprep.subr.mxu1 %v1719_v0 }
 0x42f   :  { %1501 = vmatpush3.msra.mxu1 %v750_v20 }
 0x430   :  { %1502 = vmatprep.subr.mxu1 %v1719_v0 }
 0x431   :  { %1503 = vmatpush3.msra.mxu1 %v749_v21 }
 0x432   :  { %1504 = vmatprep.subr.mxu1 %v1719_v0 }
 0x433   :  { %1505 = vmatpush3.msra.mxu1 %v748_v22 }
 0x434   :  { %1506 = vmatprep.subr.mxu1 %v1719_v0 }
 0x435   :  { %1507 = vmatpush3.msra.mxu1 %v747_v23 }
 0x436   :  { %1508 = vmatprep.subr.mxu1 %v1719_v0 }
 0x437   :  { %1509 = vmatpush3.msra.mxu1 %v746_v24 }
 0x438   :  { %1510 = vmatprep.subr.mxu1 %v1719_v0 }
 0x439   :  { %1511 = vmatpush3.msra.mxu1 %v745_v25 }
 0x43a   :  { %1512 = vmatprep.subr.mxu1 %v1719_v0 }
 0x43b   :  { %1513 = vmatpush3.msra.mxu1 %v744_v26 }
 0x43c   :  { %1514 = vmatprep.subr.mxu1 %v1719_v0 }
 0x43d   :  { %1515 = vmatpush3.msra.mxu1 %v743_v32 }
 0x43e   :  { %1516 = vmatprep.subr.mxu1 %v1719_v0 }
 0x43f   :  { %1517 = vmatpush3.msra.mxu1 %v742_v33 }
 0x440   :  { %1518 = vmatprep.subr.mxu1 %v1719_v0 }
 0x441   :  { %1519 = vmatpush3.msra.mxu1 %v741_v34 }
 0x442   :  { %1558 = vmatprep.subr.mxu1 %v1719_v0 }
 0x4e2   :  { %v638_v28 = vpop.f32.mrf.mxu1 }
 0x4e3   :  { %v639_v29 = vadd.f32 %v1068_v27, %v638_v28 }
 0x4e4   :  { %v1452_v31 = vpop.f32.mrf.mxu1 }
 0x4e5   :  { %643 = vst [vmem:[#allocation11 + $0x8] sm:$0xff] %v639_v29  ;;  %1486 = vmatmul.mubr.f32.vlgmr.msra.gmra.mxu0 %v639_v29 }
 0x4e6   :  { %1555 = vmatprep.mubr.msk.f32.mxu0 %vm1720_vm0, %v1719_v0  ;;  %1524 = vmatpush3.msra.mxu0 %v855_v35 }
 0x4e7   :  { %1525 = vmatprep.subr.mxu0 %v1719_v0 }
 0x4e8   :  { %1526 = vmatpush3.msra.mxu0 %v854_v36 }
 0x4e9   :  { %1527 = vmatprep.subr.mxu0 %v1719_v0 }
 0x4ea   :  { %1528 = vmatpush3.msra.mxu0 %v853_v37 }
 0x4eb   :  { %1529 = vmatprep.subr.mxu0 %v1719_v0 }
 0x4ec   :  { %1530 = vmatpush3.msra.mxu0 %v852_v38 }
 0x4ed   :  { %1531 = vmatprep.subr.mxu0 %v1719_v0 }
 0x4ee   :  { %1532 = vmatpush3.msra.mxu0 %v851_v39 }
 0x4ef   :  { %1533 = vmatprep.subr.mxu0 %v1719_v0 }
 0x4f0   :  { %1534 = vmatpush3.msra.mxu0 %v850_v40 }
 0x4f1   :  { %1535 = vmatprep.subr.mxu0 %v1719_v0 }
 0x4f2   :  { %1536 = vmatpush3.msra.mxu0 %v849_v41 }
 0x4f3   :  { %1537 = vmatprep.subr.mxu0 %v1719_v0 }
 0x4f4   :  { %1538 = vmatpush3.msra.mxu0 %v848_v42 }
 0x4f5   :  { %1539 = vmatprep.subr.mxu0 %v1719_v0 }
 0x4f6   :  { %1540 = vmatpush3.msra.mxu0 %v847_v43 }
 0x4f7   :  { %1541 = vmatprep.subr.mxu0 %v1719_v0 }
 0x4f8   :  { %1542 = vmatpush3.msra.mxu0 %v846_v44 }
 0x4f9   :  { %1543 = vmatprep.subr.mxu0 %v1719_v0 }
 0x4fa   :  { %1544 = vmatpush3.msra.mxu0 %v845_v45 }
 0x4fb   :  { %1545 = vmatprep.subr.mxu0 %v1719_v0 }
 0x4fc   :  { %1546 = vmatpush3.msra.mxu0 %v844_v46 }
 0x4fd   :  { %1547 = vmatprep.subr.mxu0 %v1719_v0 }
 0x4fe   :  { %1548 = vmatpush3.msra.mxu0 %v843_v47 }
 0x4ff   :  { %1549 = vmatprep.subr.mxu0 %v1719_v0 }
 0x500   :  { %1550 = vmatpush3.msra.mxu0 %v842_v54 }
 0x501   :  { %1551 = vmatprep.subr.mxu0 %v1719_v0 }
 0x502   :  { %1552 = vmatpush3.msra.mxu0 %v841_v55 }
 0x503   :  { %1553 = vmatprep.subr.mxu0 %v1719_v0 }
 0x504   :  { %1554 = vmatpush3.msra.mxu0 %v840_v56 }
 0x5a5   :  { %v735_v49 = vpop.f32.mrf.mxu0 }
 0x5a6   :  { %v736_v50 = vadd.f32 %v1069_v48, %v735_v49 }
 0x5a7   :  { %v1487_v51 = vpop.f32.mrf.mxu0 }
 0x5a8   :  { %v739_v53 = vmax.f32 %v736_v50, 0.0 }
 0x5aa   :  { %1521 = vmatmul.mubr.f32.vlgmr.msra.gmra.mxu1 %v739_v53 }
 0x5ab   :  { %1590 = vmatprep.mubr.msk.f32.mxu1 %vm1720_vm0, %v1719_v0  ;;  %1559 = vmatpush3.msra.mxu1 %v951_v57 }
 0x5ac   :  { %1560 = vmatprep.subr.mxu1 %v1719_v0 }
 0x5ad   :  { %1561 = vmatpush3.msra.mxu1 %v950_v30 }
 0x5ae   :  { %1562 = vmatprep.subr.mxu1 %v1719_v0 }
 0x5af   :  { %1563 = vmatpush3.msra.mxu1 %v949_v58 }
 0x5b0   :  { %1564 = vmatprep.subr.mxu1 %v1719_v0 }
 0x5b1   :  { %1565 = vmatpush3.msra.mxu1 %v948_v59 }
 0x5b2   :  { %1566 = vmatprep.subr.mxu1 %v1719_v0 }
 0x5b3   :  { %1567 = vmatpush3.msra.mxu1 %v947_v60 }
 0x5b4   :  { %1568 = vmatprep.subr.mxu1 %v1719_v0 }
 0x5b5   :  { %1569 = vmatpush3.msra.mxu1 %v946_v61 }
 0x5b6   :  { %1570 = vmatprep.subr.mxu1 %v1719_v0 }
 0x5b7   :  { %1571 = vmatpush3.msra.mxu1 %v945_v62 }
 0x5b8   :  { %1572 = vmatprep.subr.mxu1 %v1719_v0 }
 0x5b9   :  { %1573 = vmatpush3.msra.mxu1 %v944_v63 }
 0x5ba   :  { %1574 = vmatprep.subr.mxu1 %v1719_v0 }
 0x5bb   :  { %1575 = vmatpush3.msra.mxu1 %v943_v1 }
 0x5bc   :  { %1576 = vmatprep.subr.mxu1 %v1719_v0 }
 0x5bd   :  { %1577 = vmatpush3.msra.mxu1 %v942_v2 }
 0x5be   :  { %1578 = vmatprep.subr.mxu1 %v1719_v0 }
 0x5bf   :  { %1579 = vmatpush3.msra.mxu1 %v941_v3 }
 0x5c0   :  { %1580 = vmatprep.subr.mxu1 %v1719_v0 }
 0x5c1   :  { %1581 = vmatpush3.msra.mxu1 %v940_v4 }
 0x5c2   :  { %1582 = vmatprep.subr.mxu1 %v1719_v0 }
 0x5c3   :  { %1583 = vmatpush3.msra.mxu1 %v939_v5 }
 0x5c4   :  { %1584 = vmatprep.subr.mxu1 %v1719_v0 }
 0x5c5   :  { %1585 = vmatpush3.msra.mxu1 %v938_v11 }
 0x5c6   :  { %1586 = vmatprep.subr.mxu1 %v1719_v0 }
 0x5c7   :  { %1587 = vmatpush3.msra.mxu1 %v937_v12 }
 0x5c8   :  { %1588 = vmatprep.subr.mxu1 %v1719_v0 }
 0x5c9   :  { %1589 = vmatpush3.msra.mxu1 %v936_v13 }
 0x66a   :  { %v831_v7 = vpop.f32.mrf.mxu1 }
 0x66b   :  { %v832_v8 = vadd.f32 %v1070_v6, %v831_v7 }
 0x66c   :  { %v1522_v9 = vpop.f32.mrf.mxu1 }
 0x66d   :  { %v838_v10 = vadd.f32 %v832_v8, %v1871_v52 }
 0x66f   :  { %1556 = vmatmul.mubr.f32.vlgmr.msra.gmra.mxu0 %v838_v10 }
 0x72f   :  { %v930_v15 = vpop.f32.mrf.mxu0 }
 0x730   :  { %v931_v16 = vadd.f32 %v1071_v14, %v930_v15 }
 0x731   :  { %v1557_v17 = vpop.f32.mrf.mxu0 }
 0x732   :  { %v934_v18 = vmax.f32 %v931_v16, 0.0 }
 0x734   :  { %1591 = vmatmul.mubr.f32.vlgmr.msra.gmra.mxu1 %v934_v18 }
 0x735   :  { %1675 = shalt.err (!%p1672_p5)
}
 0x736   :  { %1052 = dma.vmem_to_hbm [thread:$0]  %s1047_s2, 256, %s1961_s4, [#allocation12], %s1713_s18, %s1713_s18, %s1714_s19   ;;  %v1072_v0 = vld [vmem:[#allocation9 + $0x9] ss:$0 sm:$0xff] }
 0x737   :  { %s1722_s10 = smov [#allocation10]  }
 0x738   :  { %s1037_s11 = sshll.u32 %s1722_s10, 4  ;;  %s1038_s11 = int_to_ptr.vmem [resolvable:$true] %s1037_s11 }
 0x739   :  { %s1684_s12 = scalar_lea.vmem %s1038_s11, 128  ;;  %p1689_p7 = scmp.lt.s32.totalorder %s1038_s11, %s1038_s11 }
 0x73a   :  { %p1685_p6 = scmp.ne.s32.totalorder %s1038_s11, %s1684_s12  ;;  %p1690_p8 = scmp.lt.s32.totalorder %s1684_s12, %s1684_s12 }
 0x73c   :  { %p1691_p9 = por %p1690_p8, %p1689_p7 }
 0x73e   :  { %p1692_p10 = pnand %p1691_p9, %p1685_p6 }
 0x7f4   :  { %v1026_v52 = vpop.f32.mrf.mxu1 }
 0x7f5   :  { %v1027_v19 = vadd.f32 %v1072_v0, %v1026_v52 }
 0x7f6   :  { %v1592_v20 = vpop.f32.mrf.mxu1 }
 0x7f7   :  { %1030 = vst [vmem:[#allocation10] sm:$0xff] %v1027_v19 }
 0x7f8   :  { %1695 = shalt.err (!%p1692_p10)
}
 0x7f9   :  { %1040 = dma.vmem_to_hbm [thread:$0]  %s1038_s11, 128, %s1960_s3, [#allocation6]  }
 0x7fa   :  { %1708 = dma.done.wait [#allocation6], 128  }
 0x7fb   :  { %1709 = vsyncadd [#allocation6], 4294967168 }
 0x7fc   :  { %1710 = dma.done.wait [#allocation12], 256  }
 0x7fd   :  { %1711 = vsyncadd [#allocation12], 4294967040 }
 0x7fe   :  { %1059 = vsyncpa [#allocation5], 1 }
 0x7ff   :  { %1060 = vsyncpa [#allocation8], 1 }
 0x800   :  { %1061 = vsyncpa [#allocation6], 1 }
 0x801   :  { %1062 = vsyncpa [#allocation12], 1 }

</bundles_post_ra>
